<compile_context>
chip_gen: v6e
topology: v6e:2x2x1
jax: 0.10.0
libtpu: 0.0.40
codegen_flags: <defaults>
</compile_context>

<pallas_src>
import functools
from typing import NamedTuple

import numpy as np

import jax
import jax.numpy as jnp
from jax.experimental import pallas as pl
from jax.experimental.pallas import tpu as pltpu


class Genotype(NamedTuple):
    down: tuple
    up: tuple


# ----------------------------------------------------------------------------
# pltpu.roll direction probe (defensive: build the taps for whichever rotation
# convention the installed jax/Mosaic uses; runs one tiny kernel once).
# ----------------------------------------------------------------------------
_ROLL_IS_JNP_LIKE = None


def _roll_is_jnp_like():
    """True iff pltpu.roll(x, s, axis) == jnp.roll(x, s, axis) (out[i]=in[i-s])."""
    global _ROLL_IS_JNP_LIKE
    if _ROLL_IS_JNP_LIKE is None:
        def probe(x_ref, o_ref):
            o_ref[...] = pltpu.roll(x_ref[...], 1, 1)

        x = jnp.tile(jnp.arange(128, dtype=jnp.float32)[None, :], (8, 1))
        y = pl.pallas_call(
            probe, out_shape=jax.ShapeDtypeStruct((8, 128), jnp.float32))(x)
        _ROLL_IS_JNP_LIKE = bool(jax.device_get(y)[0, 0] == 127.0)
    return _ROLL_IS_JNP_LIKE


# ----------------------------------------------------------------------------
# Fused cell kernel factory.  One grid step == B_TILE batch images; every
# activation is a (channels, B_TILE*H*W) lane-dense slab.
# ----------------------------------------------------------------------------
def _build_cell_kernel(genolist, n_nodes, c_node, H, W, b_tile, downward,
                       need_masks, num_conv, conv_rank, roll_jnp_like):
    M = H * W
    M0 = 4 * M          # full-resolution spatial size (downward only)
    L = b_tile * M      # lanes per grid step (batch folded into lanes)
    f32 = jnp.float32
    bf16 = jnp.bfloat16

    def kernel(*refs):
        it = iter(refs)
        x0_ref = next(it)
        x1_ref = next(it)
        sel_ref = next(it) if downward else None
        p0w_ref = next(it)
        p1w_ref = next(it)
        bias_ref = next(it)
        masks_ref = next(it) if need_masks else None
        convw_ref = next(it) if num_conv else None
        out_ref = next(it)

        def bias(row0):                                     # (c_node, 1) f32
            return bias_ref[row0:row0 + c_node, :]

        # ---- preprocess0: (stride-2 selection if downward) -> ReLU -> 1x1 -> BN
        if downward:
            # one exact f32 0/1-selector matmul per image, aligned lane concat
            parts = [
                jnp.dot(x0_ref[:, b * M0:(b + 1) * M0], sel_ref[...],
                        preferred_element_type=f32)
                for b in range(b_tile)
            ]
            z0 = parts[0] if b_tile == 1 else jnp.concatenate(parts, axis=1)
            z0 = jnp.maximum(z0, 0.0)                       # (c0, L)
        else:
            z0 = jnp.maximum(x0_ref[...], 0.0)              # (c0, L)
        node0 = jnp.dot(p0w_ref[...], z0.astype(bf16),
                        preferred_element_type=f32) + bias(0)

        # ---- preprocess1: ReLU -> 1x1 -> BN
        z1 = jnp.maximum(x1_ref[...], 0.0)
        node1 = jnp.dot(p1w_ref[...], z1.astype(bf16),
                        preferred_element_type=f32) + bias(c_node)

        if need_masks:
            m_r = masks_ref[0:1, :]    # valid for tap dw=+1  (w != W-1)
            m_l = masks_ref[1:2, :]    # valid for tap dw=-1  (w != 0)
            m_b = masks_ref[2:3, :]    # valid for tap dh=+1  (h != H-1)
            m_t = masks_ref[3:4, :]    # valid for tap dh=-1  (h != 0)

        def tap(v, dh, dw):
            """tap[p] = v[p + dh*W + dw] inside the image, else 0 (XLU roll + mask)."""
            d = dh * W + dw
            if d != 0:
                s = ((-d) % L) if roll_jnp_like else (d % L)
                v = pltpu.roll(v, s, 1)
            if dw == 1:
                v = v * m_r
            elif dw == -1:
                v = v * m_l
            if dh == 1:
                v = v * m_b
            elif dh == -1:
                v = v * m_t
            return v

        patches_cache = {}

        def conv_patches(src, v):
            """im2col patches (9*c_node, L) of ReLU(v); shared by convs with same src."""
            if src not in patches_cache:
                a = jnp.maximum(v, 0.0)                     # ReLU before conv
                taps = [tap(a, kh - 1, kw - 1)
                        for kh in range(3) for kw in range(3)]
                patches_cache[src] = jnp.concatenate(taps, axis=0).astype(bf16)
            return patches_cache[src]

        def apply_op(op_idx, name, src, v):
            if name == "identity":
                return v
            if name == "avg_pool_3x3":
                # separable 3x3 mean (count_include_pad=True -> /9)
                cs = tap(v, 0, -1) + v + tap(v, 0, 1)
                rs = tap(cs, -1, 0) + cs + tap(cs, 1, 0)
                return rs * (1.0 / 9.0)
            if name == "conv_3x3":
                r = conv_rank[op_idx]
                w = convw_ref[r * c_node:(r + 1) * c_node, :]   # (c_node, 9*c_node)
                p = conv_patches(src, v)
                return (jnp.dot(w, p, preferred_element_type=f32)
                        + bias(2 * c_node + r * c_node))
            raise ValueError(f"unknown op {name}")

        xs = [node0, node1]
        k = 0
        for node_i in range(n_nodes):
            name_a, src_a = genolist[k]
            out_a = apply_op(k, name_a, src_a, xs[src_a]); k += 1
            name_b, src_b = genolist[k]
            out_b = apply_op(k, name_b, src_b, xs[src_b]); k += 1
            nd = out_a + out_b                              # fused node sum
            xs.append(nd)
            # fused channel concat: store into the aligned sublane slot now
            out_ref[node_i * c_node:(node_i + 1) * c_node, :] = nd

    return kernel


# ----------------------------------------------------------------------------
# Forward wrapper (single pallas_call; NCHW in -> NCHW out)
# ----------------------------------------------------------------------------
@functools.partial(jax.jit, static_argnames=("genolist", "n_nodes", "downward",
                                             "b_tile", "roll_jnp_like"))
def _searched_cell_impl(params, x0, x1, *, genolist, n_nodes, downward,
                        b_tile, roll_jnp_like):
    f32, bf16 = jnp.float32, jnp.bfloat16
    x0 = x0.astype(f32)
    x1 = x1.astype(f32)
    N, c0, H0, W0 = x0.shape
    N1, c1, H1, W1 = x1.shape
    assert N == N1 and N % b_tile == 0
    if downward:
        assert H0 % 2 == 0 and W0 % 2 == 0
        H, W = H0 // 2, W0 // 2
    else:
        H, W = H0, W0
    assert (H, W) == (H1, W1), "spatial mismatch between the two cell inputs"
    M, M0 = H * W, H0 * W0
    L = b_tile * M
    c_node = params["pre0"]["w"].shape[0]
    c_total = n_nodes * c_node

    for name, _src in genolist:
        if name not in ("identity", "conv_3x3", "avg_pool_3x3"):
            raise ValueError(f"unsupported op {name}")
    need_masks = any(n in ("conv_3x3", "avg_pool_3x3") for n, _ in genolist)
    conv_rank = {}
    for idx, (name, _src) in enumerate(genolist):
        if name == "conv_3x3":
            conv_rank[idx] = len(conv_rank)
    num_conv = len(conv_rank)

    # channel-major layout, batch folded into the lane dimension
    x0_cm = jnp.transpose(x0, (1, 0, 2, 3)).reshape(c0, N * (M0 if downward else M))
    x1_cm = jnp.transpose(x1, (1, 0, 2, 3)).reshape(c1, N * M)

    # fold BN scale into weights (bf16 MXU inputs); pack all biases into one array
    def fold_1x1(p):
        return (p["w"] * p["scale"][:, None]).astype(bf16)

    p0w, p1w = fold_1x1(params["pre0"]), fold_1x1(params["pre1"])
    bias_rows = [params["pre0"]["bias"], params["pre1"]["bias"]]
    conv_ws = []
    for idx in sorted(conv_rank, key=conv_rank.get):
        p = params["ops"][idx]
        co, ci = p["w"].shape[0], p["w"].shape[1]
        wf = p["w"] * p["scale"][:, None, None, None]
        wf = jnp.transpose(wf, (0, 2, 3, 1)).reshape(co, 9 * ci).astype(bf16)
        conv_ws.append(wf)
        bias_rows.append(p["bias"])
    biases = jnp.concatenate(bias_rows, axis=0).astype(f32)[:, None]   # (R, 1)

    inputs = [x0_cm, x1_cm]
    in_specs = [
        pl.BlockSpec((c0, b_tile * (M0 if downward else M)), lambda i: (0, i)),
        pl.BlockSpec((c1, L), lambda i: (0, i)),
    ]
    if downward:
        # (M0, M) 0/1 selector picking even rows & cols (exact f32 selection)
        j = np.arange(M)
        rows = (2 * (j // W)) * W0 + 2 * (j % W)
        sel_np = np.zeros((M0, M), np.float32)
        sel_np[rows, j] = 1.0
        inputs.append(jnp.asarray(sel_np))
        in_specs.append(pl.BlockSpec((M0, M), lambda i: (0, 0)))
    inputs += [p0w, p1w, biases]
    in_specs += [pl.BlockSpec(p0w.shape, lambda i: (0, 0)),
                 pl.BlockSpec(p1w.shape, lambda i: (0, 0)),
                 pl.BlockSpec(biases.shape, lambda i: (0, 0))]
    if need_masks:
        # row/col validity masks with zeros at every image seam of the folded slab
        pos = np.arange(L) % M
        wi, hi = pos % W, pos // W
        masks_np = np.stack([(wi != W - 1), (wi != 0),
                             (hi != H - 1), (hi != 0)]).astype(np.float32)
        inputs.append(jnp.asarray(masks_np))
        in_specs.append(pl.BlockSpec((4, L), lambda i: (0, 0)))
    if num_conv:
        convw = jnp.concatenate(conv_ws, axis=0)        # (num_conv*c_node, 9*c_node)
        inputs.append(convw)
        in_specs.append(pl.BlockSpec(convw.shape, lambda i: (0, 0)))

    kernel = _build_cell_kernel(genolist, n_nodes, c_node, H, W, b_tile,
                                downward, need_masks, num_conv, conv_rank,
                                roll_jnp_like)

    out_cm = pl.pallas_call(
        kernel,
        out_shape=jax.ShapeDtypeStruct((c_total, N * M), f32),
        grid=(N // b_tile,),
        in_specs=in_specs,
        out_specs=pl.BlockSpec((c_total, L), lambda i: (0, i)),
        compiler_params=pltpu.CompilerParams(
            dimension_semantics=("parallel",)),
    )(*inputs)
    # (c_total, N*H*W) -> NCHW (reshape is free; one layout transpose outside kernel)
    return jnp.transpose(out_cm.reshape(c_total, N, H, W), (1, 0, 2, 3))


def _pick_b_tile(N, M):
    best = 1
    for bt in range(1, N + 1):
        if N % bt:
            continue
        if N >= 2 and N // bt < 2:
            continue          # keep >=2 grid steps so both v7x TensorCores get work
        if bt * M > 16384:
            continue          # bound per-step VMEM footprint (fits v7x 64 MiB easily)
        best = bt
    return best


def searched_cell_forward(params, x0, x1, *, genolist, n_nodes, downward=True,
                          b_tile=None):
    N, _, H0, W0 = x0.shape
    M = (H0 // 2) * (W0 // 2) if downward else H0 * W0
    if b_tile is None:
        b_tile = _pick_b_tile(N, M)
    return _searched_cell_impl(params, x0, x1, genolist=tuple(genolist),
                               n_nodes=n_nodes, downward=downward,
                               b_tile=b_tile, roll_jnp_like=_roll_is_jnp_like())


# ----------------------------------------------------------------------------
# Pure-JAX reference (NCHW, un-folded params, HIGHEST precision)
# ----------------------------------------------------------------------------
_HI = jax.lax.Precision.HIGHEST


def searched_cell_reference(params, x0, x1, genolist, n_nodes, downward=True):
    def conv1x1(x, p, stride):
        if stride == 2:
            x = x[:, :, ::2, ::2]
        y = jnp.einsum("oc,nchw->nohw", p["w"], jnp.maximum(x, 0.0), precision=_HI)
        return y * p["scale"][None, :, None, None] + p["bias"][None, :, None, None]

    def conv3x3(x, p):
        n, c, hh, ww = x.shape
        xp = jnp.pad(jnp.maximum(x, 0.0), ((0, 0), (0, 0), (1, 1), (1, 1)))
        y = jnp.zeros((n, p["w"].shape[0], hh, ww), jnp.float32)
        for kh in range(3):
            for kw in range(3):
                y = y + jnp.einsum("oc,nchw->nohw", p["w"][:, :, kh, kw],
                                   xp[:, :, kh:kh + hh, kw:kw + ww], precision=_HI)
        return y * p["scale"][None, :, None, None] + p["bias"][None, :, None, None]

    def pool(x):
        n, c, hh, ww = x.shape
        xp = jnp.pad(x, ((0, 0), (0, 0), (1, 1), (1, 1)))
        acc = jnp.zeros_like(x)
        for kh in range(3):
            for kw in range(3):
                acc = acc + xp[:, :, kh:kh + hh, kw:kw + ww]
        return acc / 9.0

    xs = [conv1x1(x0.astype(jnp.float32), params["pre0"], 2 if downward else 1),
          conv1x1(x1.astype(jnp.float32), params["pre1"], 1)]
    i = 0
    for _ in range(n_nodes):
        outs = []
        for _ in range(2):
            name, src = genolist[i]
            if name == "identity":
                outs.append(xs[src])
            elif name == "conv_3x3":
                outs.append(conv3x3(xs[src], params["ops"][i]))
            elif name == "avg_pool_3x3":
                outs.append(pool(xs[src]))
            else:
                raise ValueError(name)
            i += 1
        xs.append(outs[0] + outs[1])
    return jnp.concatenate(xs[-n_nodes:], axis=1)


# ----------------------------------------------------------------------------
# Deterministic parameter initialization (inference-mode BN folded to affine)
# ----------------------------------------------------------------------------
def _bn_affine(key, c):
    k1, k2, k3, k4 = jax.random.split(key, 4)
    gamma = 1.0 + 0.1 * jax.random.normal(k1, (c,), jnp.float32)
    beta = 0.1 * jax.random.normal(k2, (c,), jnp.float32)
    mean = 0.1 * jax.random.normal(k3, (c,), jnp.float32)
    var = 1.0 + 0.1 * jax.random.uniform(k4, (c,), jnp.float32)
    scale = gamma / jnp.sqrt(var + 1e-5)
    bias = beta - mean * scale
    return scale, bias


def init_params(key, c0, c1, c_node, genolist):
    keys = jax.random.split(key, 4 + 2 * len(genolist))
    s0, b0 = _bn_affine(keys[1], c_node)
    s1, b1 = _bn_affine(keys[3], c_node)
    params = {
        "pre0": {"w": 0.1 * jax.random.normal(keys[0], (c_node, c0), jnp.float32),
                 "scale": s0, "bias": b0},
        "pre1": {"w": 0.1 * jax.random.normal(keys[2], (c_node, c1), jnp.float32),
                 "scale": s1, "bias": b1},
        "ops": [],
    }
    for idx, (name, _src) in enumerate(genolist):
        if name == "conv_3x3":
            kw_, kb_ = keys[4 + 2 * idx], keys[5 + 2 * idx]
            s, b = _bn_affine(kb_, c_node)
            params["ops"].append(
                {"w": 0.1 * jax.random.normal(kw_, (c_node, c_node, 3, 3), jnp.float32),
                 "scale": s, "bias": b})
        else:
            params["ops"].append(None)
    return params


# ----------------------------------------------------------------------------
if __name__ == "__main__":
    n_nodes, c0, c1, c_node = 2, 4, 4, 8
    gene = Genotype(
        down=(("conv_3x3", 0), ("identity", 1), ("avg_pool_3x3", 2), ("conv_3x3", 1)),
        up=(("identity", 0), ("identity", 1), ("identity", 2), ("identity", 1)),
    )

    key = jax.random.PRNGKey(0)
    k0, k1, k2, kp_d, kp_u = jax.random.split(key, 5)

    # ---- downward cell: x0 full-res (stride-2 preprocess), x1 half-res -------
    x0 = jax.random.normal(k0, (4, c0, 32, 32), jnp.float32)   # NCHW
    x1 = jax.random.normal(k1, (4, c1, 16, 16), jnp.float32)   # NCHW
    params_d = init_params(kp_d, c0, c1, c_node, gene.down)

    out_d = searched_cell_forward(params_d, x0, x1, genolist=gene.down,
                                  n_nodes=n_nodes, downward=True)
    out_d = jax.block_until_ready(out_d)
    ref_d = searched_cell_reference(params_d, x0, x1, gene.down, n_nodes, True)
    assert out_d.shape == (4, n_nodes * c_node, 16, 16), out_d.shape
    assert bool(jnp.all(jnp.isfinite(out_d)))
    err_d = float(jnp.max(jnp.abs(out_d - ref_d)))
    assert bool(jnp.allclose(out_d, ref_d, atol=2e-2, rtol=2e-2)), err_d

    # ---- upward cell: both inputs at the same resolution, all-identity ops ---
    x2 = jax.random.normal(k2, (4, c0, 16, 16), jnp.float32)
    params_u = init_params(kp_u, c0, c1, c_node, gene.up)
    out_u = searched_cell_forward(params_u, x2, x1, genolist=gene.up,
                                  n_nodes=n_nodes, downward=False)
    out_u = jax.block_until_ready(out_u)
    ref_u = searched_cell_reference(params_u, x2, x1, gene.up, n_nodes, False)
    assert out_u.shape == (4, n_nodes * c_node, 16, 16), out_u.shape
    err_u = float(jnp.max(jnp.abs(out_u - ref_u)))
    assert bool(jnp.allclose(out_u, ref_u, atol=2e-2, rtol=2e-2)), err_u

    print("KERNEL_OK")
</pallas_src>

<mosaic_0001>
module attributes {stable_mosaic.version = 11 : i64} {
  func.func @probe(%arg0: memref<8x128xf32, #tpu.memory_space<vmem>>, %arg1: memref<8x128xf32, #tpu.memory_space<vmem>>) attributes {dimension_semantics = [], scalar_prefetch = 0 : i64, scratch_operands = 0 : i64, tpu.core_type = #tpu.core_type<tc>} {
    %c0 = arith.constant 0 : index
    %c0_0 = arith.constant 0 : index
    %0 = vector.load %arg0[%c0, %c0_0] : memref<8x128xf32, #tpu.memory_space<vmem>>, vector<8x128xf32>
    %c1_i32 = arith.constant 1 : i32
    %1 = tpu.dynamic_rotate %0 by %c1_i32 dim 1 : vector<8x128xf32>, i32 -> vector<8x128xf32>
    %c0_1 = arith.constant 0 : index
    %c0_2 = arith.constant 0 : index
    %2 = vector.load %arg1[%c0_1, %c0_2] : memref<8x128xf32, #tpu.memory_space<vmem>>, vector<8x128xf32>
    tpu.vector_store %arg1[%c0_1, %c0_2], %1 {strides = array<i32>} : memref<8x128xf32, #tpu.memory_space<vmem>>, vector<8x128xf32>,
    return
  }
}

</mosaic_0001>

<bundles_post_ra>
// kernel: tpu_custom_call.1
= control target key start
LH: loop header
LB: loop body
LE: loop exit
PB: predicated region body
PF: predicated region fallthrough
CT: control target
= control target key end

     0   :  { %6 = vsyncpa [#allocation3], 0  ;;  %s106_s0 = inlined_call_operand.hbm [shape: f32[8,128], index: 0, kind: input, shape index: {}]   ;;  %s107_s1 = inlined_call_operand.hbm [shape: f32[8,128], index: 1, kind: output, shape index: {}]  }
   0x1   :  { %7 = vsyncpa [#allocation4], 0  ;;  %s87_s6 = smov [#allocation2]  }
   0x2   :  { %s14_s7 = sshll.u32 %s87_s6, 4  ;;  %s15_s7 = int_to_ptr.vmem [resolvable:$true] %s14_s7 }
   0x3   :  { %s51_s8 = scalar_lea.vmem %s15_s7, 128  ;;  %p56_p1 = scmp.lt.s32.totalorder %s15_s7, %s15_s7 }
   0x4   :  { %p52_p0 = scmp.ne.s32.totalorder %s15_s7, %s51_s8  ;;  %p57_p2 = scmp.lt.s32.totalorder %s51_s8, %s51_s8 }
   0x6   :  { %p58_p3 = por %p57_p2, %p56_p1 }
   0x8   :  { %p59_p4 = pnand %p58_p3, %p52_p0 }
   0xa   :  { %62 = shalt.err (!%p59_p4)
}
   0xb   :  { %17 = dma.hbm_to_vmem [thread:$0]  %s106_s0, 128, %s15_s7, [#allocation3]  }
   0xc   :  { %83 = dma.done.wait [#allocation3], 128  }
   0xd   :  { %84 = vsyncadd [#allocation3], 4294967168  ;;  %v21_v0 = vld [vmem:[#allocation2] sm:$0xff]  ;;  %s88_s11 = smov 1   ;;  %s89_s12 = smov [#allocation5]  }
   0xe   :  { %22 = vrot.lane.b32.xlu0 %v21_v0, %s88_s11  ;;  %s31_s13 = sshll.u32 %s89_s12, 4  ;;  %s32_s13 = int_to_ptr.vmem [resolvable:$true] %s31_s13 }
   0xf   :  { %s63_s14 = scalar_lea.vmem %s32_s13, 128  ;;  %p68_p6 = scmp.lt.s32.totalorder %s32_s13, %s32_s13 }
  0x10   :  { %p64_p5 = scmp.ne.s32.totalorder %s32_s13, %s63_s14  ;;  %p69_p7 = scmp.lt.s32.totalorder %s63_s14, %s63_s14 }
  0x12   :  { %p70_p8 = por %p69_p7, %p68_p6 }
  0x14   :  { %p71_p9 = pnand %p70_p8, %p64_p5 }
  0x80   :  { %v23_v1 = vpop.permute.xlu0 %22 }
  0x81   :  { %24 = vst [vmem:[#allocation5] sm:$0xff] %v23_v1 }
  0x82   :  { %74 = shalt.err (!%p71_p9)
}
  0x83   :  { %34 = dma.vmem_to_hbm [thread:$0]  %s32_s13, 128, %s107_s1, [#allocation4]  }
  0x84   :  { %85 = dma.done.wait [#allocation4], 128  }
  0x85   :  { %86 = vsyncadd [#allocation4], 4294967168 }
  0x86   :  { %38 = vsyncpa [#allocation3], 1 }
  0x87   :  { %39 = vsyncpa [#allocation4], 1 }

</bundles_post_ra>
